<compile_context>
chip_gen: v7x
topology: tpu7x:2x2x1
jax: 0.10.0
libtpu: 0.0.40
codegen_flags: <defaults>
</compile_context>

<pallas_src>
import functools

import jax
import jax.numpy as jnp
from jax import lax
from jax.experimental import pallas as pl
from jax.experimental.pallas import tpu as pltpu


def _round_up(x, m):
    return (x + m - 1) // m * m


# ------------------------------- kernel -----------------------------------

def _mlp_base_kernel(hidden, x_ref, w1_ref, w2_ref, bpack_ref, out_ref):
    """Fused actor+critic trunk.

    Lane layout of the 2H-wide trunk: [0:H) = actor, [H:2H) = critic.
    bpack rows: 0 = b1, 1 = b2, 2 = value-head row (zero on actor lanes),
    3 = bv (scalar broadcast).  MXU operands bf16, everything else f32.
    """
    x = x_ref[...]                                              # bf16 (TB, obs)

    # fused trunk: two 128-lane bf16 matmuls (f32 acc) + full-vreg tanh passes
    h1 = jnp.tanh(jnp.dot(x, w1_ref[...],
                          preferred_element_type=jnp.float32) + bpack_ref[0:1, :])
    h2 = jnp.tanh(jnp.dot(h1.astype(w2_ref.dtype), w2_ref[...],
                          preferred_element_type=jnp.float32) + bpack_ref[1:2, :])

    # value head: VPU multiply + lane reduction (wv row is zero on actor lanes);
    # +bv folded in while the value is still (TB, 1).
    val = (jnp.sum(h2 * bpack_ref[2:3, :], axis=-1, keepdims=True)
           + bpack_ref[3:4, 0:1])                               # (TB, 1)

    # single lane-dense output slab: [0:H) actor features, [H:2H) value (replicated)
    lane = lax.broadcasted_iota(jnp.int32, h2.shape, 1)
    out_ref[...] = jnp.where(lane < hidden, h2, val).astype(out_ref.dtype)


# ------------------------------ wrapper ------------------------------------

_FAST_PATH_MAX_ROWS = 64   # rollout-size batches: XLA fusion beats kernel launch cost


def _fused_forward(x, packed):
    """Pure-JAX version of the fused kernel math (small-batch fast path and
    bit-near reference for the kernel path)."""
    w1, w2, bpack = packed["w1"], packed["w2"], packed["bpack"]
    xb = x.astype(w1.dtype)
    h1 = jnp.tanh(jnp.dot(xb, w1, preferred_element_type=jnp.float32) + bpack[0:1, :])
    h2 = jnp.tanh(jnp.dot(h1.astype(w2.dtype), w2,
                          preferred_element_type=jnp.float32) + bpack[1:2, :])
    val = jnp.sum(h2 * bpack[2:3, :], axis=-1, keepdims=True) + bpack[3:4, 0:1]
    return val, h2


def policy_forward(x, rnn_hxs, masks, packed, *, out_dtype=jnp.float32):
    """Equivalent of MLPBase.forward(inputs, rnn_hxs, masks), non-recurrent."""
    del masks  # only used by the recurrent path (recurrent=False here)
    w1, w2, bpack = packed["w1"], packed["w2"], packed["bpack"]
    obs_dim, twoh = w1.shape
    hidden = twoh // 2
    n = x.shape[0]

    # Small-batch fast path (Policy.act rollouts).
    if n <= _FAST_PATH_MAX_ROWS:
        val, h2 = _fused_forward(x, packed)
        return val.astype(jnp.float32), h2[:, :hidden], rnn_hxs

    # Batch tiling: ~512-row tiles, always >= 2 grid steps (v7x has 2 TCs and
    # the "parallel" axis is how work shards across them).  Tile is a multiple
    # of 8 (sublane) and padding waste is at most one sublane row per step.
    n8 = _round_up(n, 8)
    num_steps = max(2, pl.cdiv(n8, 512))
    tb = _round_up(pl.cdiv(n8, num_steps), 8)
    n_pad = tb * num_steps

    x = x.astype(w1.dtype)                      # bf16: halves the x HBM read
    if n_pad != n:
        x = jnp.pad(x, ((0, n_pad - n), (0, 0)))

    out = pl.pallas_call(
        functools.partial(_mlp_base_kernel, hidden),
        grid=(num_steps,),
        in_specs=[
            pl.BlockSpec((tb, obs_dim), lambda i: (i, 0)),      # x: batch-blocked
            pl.BlockSpec((obs_dim, twoh), lambda i: (0, 0)),    # W1: VMEM-resident
            pl.BlockSpec((twoh, twoh), lambda i: (0, 0)),       # W2: VMEM-resident
            pl.BlockSpec((4, twoh), lambda i: (0, 0)),          # packed biases / wv
        ],
        out_specs=pl.BlockSpec((tb, twoh), lambda i: (i, 0)),
        out_shape=jax.ShapeDtypeStruct((n_pad, twoh), out_dtype),
        compiler_params=pltpu.CompilerParams(
            dimension_semantics=("parallel",)),
    )(x, w1, w2, bpack)

    actor_features = out[:n, :hidden]
    value = out[:n, hidden:hidden + 1]
    return value, actor_features, rnn_hxs


# --------------------------- parameter handling -----------------------------

def _orthogonal(key, shape, gain):
    """Deterministic orthogonal init (QR of a Gaussian), returned as (in, out)."""
    rows, cols = shape
    flip = rows < cols
    a = jax.random.normal(key, (max(rows, cols), min(rows, cols)), jnp.float32)
    q, r = jnp.linalg.qr(a)
    q = q * jnp.sign(jnp.diag(r))[None, :]
    if flip:
        q = q.T
    return gain * q[:rows, :cols]


def init_policy_params(key, obs_dim, hidden):
    ks = jax.random.split(key, 5)
    gain = jnp.sqrt(2.0)  # np.sqrt(2) gain used in MLPBase init_
    return {
        # critic trunk
        "wc1": _orthogonal(ks[0], (obs_dim, hidden), gain),
        "bc1": jnp.zeros((1, hidden), jnp.float32),
        "wc2": _orthogonal(ks[1], (hidden, hidden), gain),
        "bc2": jnp.zeros((1, hidden), jnp.float32),
        # actor trunk
        "wa1": _orthogonal(ks[2], (obs_dim, hidden), gain),
        "ba1": jnp.zeros((1, hidden), jnp.float32),
        "wa2": _orthogonal(ks[3], (hidden, hidden), gain),
        "ba2": jnp.zeros((1, hidden), jnp.float32),
        # critic_linear (gain = 1)
        "wv": _orthogonal(ks[4], (hidden, 1), 1.0),
        "bv": jnp.zeros((1, 1), jnp.float32),
    }


def pack_params(p):
    """Fuse per-layer params into the lane-packed layout used by the kernel.

    Weights are stored bf16 (MXU-native on v6e/v7x, halves weight DMA);
    biases / value-head row stay f32 (used on the VPU/EUP side).
    """
    hidden = p["wa1"].shape[1]
    twoh = 2 * hidden
    # lanes [0:H) = actor, [H:2H) = critic
    w1 = jnp.concatenate([p["wa1"], p["wc1"]], axis=1)                     # (obs, 2H)
    w2 = jnp.zeros((twoh, twoh), jnp.float32)
    w2 = w2.at[:hidden, :hidden].set(p["wa2"]).at[hidden:, hidden:].set(p["wc2"])
    b1 = jnp.concatenate([p["ba1"], p["bc1"]], axis=1)                     # (1, 2H)
    b2 = jnp.concatenate([p["ba2"], p["bc2"]], axis=1)                     # (1, 2H)
    wv_row = jnp.concatenate(
        [jnp.zeros((1, hidden), jnp.float32), p["wv"].T], axis=1)          # (1, 2H)
    bv_row = jnp.broadcast_to(p["bv"], (1, twoh))                          # (1, 2H)
    bpack = jnp.concatenate([b1, b2, wv_row, bv_row], axis=0)              # (4, 2H)
    return {"w1": w1.astype(jnp.bfloat16),
            "w2": w2.astype(jnp.bfloat16),
            "bpack": bpack}


def policy_forward_ref(x, rnn_hxs, masks, p):
    """Pure-JAX f32 reference of MLPBase.forward (for correctness check)."""
    del masks
    hc = jnp.tanh(x @ p["wc1"] + p["bc1"])
    hc = jnp.tanh(hc @ p["wc2"] + p["bc2"])
    value = hc @ p["wv"] + p["bv"]
    ha = jnp.tanh(x @ p["wa1"] + p["ba1"])
    ha = jnp.tanh(ha @ p["wa2"] + p["ba2"])
    return value, ha, rnn_hxs


# --------------------------------- test -------------------------------------

if __name__ == "__main__":
    key = jax.random.PRNGKey(0)
    k_param, k_x1, k_x2, k_x3 = jax.random.split(key, 4)

    obs_dim, hidden = 32, 64  # obs_shape = (32,) -> MLPBase(hidden=64)
    params = init_policy_params(k_param, obs_dim, hidden)
    packed = pack_params(params)

    def check(batch, kx):
        x = jax.random.normal(kx, (batch, obs_dim), jnp.float32)
        rnn_hxs = jnp.zeros((batch, 1), jnp.float32)   # non-recurrent: size 1
        masks = jnp.ones((batch, 1), jnp.float32)

        value, actor, hxs_out = policy_forward(x, rnn_hxs, masks, packed)
        jax.block_until_ready((value, actor, hxs_out))

        assert value.shape == (batch, 1)
        assert actor.shape == (batch, hidden)

        # (a) vs. identical bf16-operand fused math in plain JAX (kernel fidelity)
        v_fused, h2_fused = _fused_forward(x, packed)
        assert jnp.allclose(value, v_fused, atol=1e-4), "value vs fused mismatch"
        assert jnp.allclose(actor, h2_fused[:, :hidden], atol=1e-4), \
            "actor vs fused mismatch"

        # (b) vs. full-f32 module reference (bf16 MXU operands => loosened tol)
        v_ref, a_ref, h_ref = policy_forward_ref(x, rnn_hxs, masks, params)
        assert jnp.allclose(value, v_ref, atol=5e-2), "value vs f32 ref mismatch"
        assert jnp.allclose(actor, a_ref, atol=5e-2), "actor vs f32 ref mismatch"
        assert jnp.allclose(hxs_out, h_ref), "rnn_hxs mismatch"

    check(8, k_x1)      # rollout-size batch -> small-batch fast path
    check(300, k_x2)    # update-size batch  -> Pallas kernel, 2 x 152-row tiles
    check(1024, k_x3)   # larger update batch -> Pallas kernel, 2 x 512-row tiles

    print("KERNEL_OK")
</pallas_src>

<mosaic_0001>
module attributes {stable_mosaic.version = 11 : i64} {
  func.func @_mlp_base_kernel(%arg0: i32, %arg1: memref<152x32xbf16, #tpu.memory_space<vmem>>, %arg2: memref<32x128xbf16, #tpu.memory_space<vmem>>, %arg3: memref<128x128xbf16, #tpu.memory_space<vmem>>, %arg4: memref<4x128xf32, #tpu.memory_space<vmem>>, %arg5: memref<152x128xf32, #tpu.memory_space<vmem>>) attributes {dimension_semantics = [#tpu.dimension_semantics<parallel>], iteration_bounds = array<i64: 2>, scalar_prefetch = 0 : i64, scratch_operands = 0 : i64, tpu.core_type = #tpu.core_type<tc>, window_params = [{transform_indices = @transform_0, window_bounds = array<i64: 152, 32>}, {pipeline_mode = #tpu.pipeline_mode<synchronous>, transform_indices = @transform_1, window_bounds = array<i64: 32, 128>}, {pipeline_mode = #tpu.pipeline_mode<synchronous>, transform_indices = @transform_2, window_bounds = array<i64: 128, 128>}, {pipeline_mode = #tpu.pipeline_mode<synchronous>, transform_indices = @transform_3, window_bounds = array<i64: 4, 128>}, {transform_indices = @transform_4, window_bounds = array<i64: 152, 128>}]} {
    %c0 = arith.constant 0 : index
    %c0_0 = arith.constant 0 : index
    %0 = vector.load %arg1[%c0, %c0_0] : memref<152x32xbf16, #tpu.memory_space<vmem>>, vector<152x32xbf16>
    %c0_1 = arith.constant 0 : index
    %c0_2 = arith.constant 0 : index
    %1 = vector.load %arg2[%c0_1, %c0_2] : memref<32x128xbf16, #tpu.memory_space<vmem>>, vector<32x128xbf16>
    %cst = arith.constant dense<0.000000e+00> : vector<152x128xf32>
    %2 = tpu.matmul %0, %1, %cst {dimension_numbers = #tpu.dot_dimension_numbers<[1], [0], [0], [1], [0, 0, 1, 1], [], []>} : vector<152x32xbf16>, vector<32x128xbf16>, vector<152x128xf32> -> vector<152x128xf32>
    %c0_3 = arith.constant 0 : index
    %c0_4 = arith.constant 0 : index
    %3 = vector.load %arg4[%c0_3, %c0_4] : memref<4x128xf32, #tpu.memory_space<vmem>>, vector<1x128xf32>
    %4 = vector.broadcast %3 : vector<1x128xf32> to vector<152x128xf32>
    %5 = arith.addf %2, %4 : vector<152x128xf32>
    %6 = math.tanh %5 : vector<152x128xf32>
    %7 = arith.truncf %6 : vector<152x128xf32> to vector<152x128xbf16>
    %c0_5 = arith.constant 0 : index
    %c0_6 = arith.constant 0 : index
    %8 = vector.load %arg3[%c0_5, %c0_6] : memref<128x128xbf16, #tpu.memory_space<vmem>>, vector<128x128xbf16>
    %cst_7 = arith.constant dense<0.000000e+00> : vector<152x128xf32>
    %9 = tpu.matmul %7, %8, %cst_7 {dimension_numbers = #tpu.dot_dimension_numbers<[1], [0], [0], [1], [0, 0, 1, 1], [], []>} : vector<152x128xbf16>, vector<128x128xbf16>, vector<152x128xf32> -> vector<152x128xf32>
    %c1 = arith.constant 1 : index
    %c0_8 = arith.constant 0 : index
    %10 = vector.load %arg4[%c1, %c0_8] : memref<4x128xf32, #tpu.memory_space<vmem>>, vector<1x128xf32>
    %11 = vector.broadcast %10 : vector<1x128xf32> to vector<152x128xf32>
    %12 = arith.addf %9, %11 : vector<152x128xf32>
    %13 = math.tanh %12 : vector<152x128xf32>
    %c2 = arith.constant 2 : index
    %c0_9 = arith.constant 0 : index
    %14 = vector.load %arg4[%c2, %c0_9] : memref<4x128xf32, #tpu.memory_space<vmem>>, vector<1x128xf32>
    %15 = vector.broadcast %14 : vector<1x128xf32> to vector<152x128xf32>
    %16 = arith.mulf %13, %15 : vector<152x128xf32>
    %cst_10 = arith.constant dense<0.000000e+00> : vector<152xf32>
    %17 = vector.multi_reduction <add>, %16, %cst_10 [1] : vector<152x128xf32> to vector<152xf32>
    %18 = vector.shape_cast %17 : vector<152xf32> to vector<152x1xf32>
    %c3 = arith.constant 3 : index
    %c0_11 = arith.constant 0 : index
    %19 = vector.load %arg4[%c3, %c0_11] : memref<4x128xf32, #tpu.memory_space<vmem>>, vector<1x1xf32>
    %20 = vector.broadcast %19 : vector<1x1xf32> to vector<152x1xf32>
    %21 = arith.addf %18, %20 : vector<152x1xf32>
    %22 = tpu.iota {dimensions = array<i32: 1>} : vector<152x128xi32>
    %c64_i32 = arith.constant 64 : i32
    %23 = vector.broadcast %c64_i32 : i32 to vector<152x128xi32>
    %24 = arith.cmpi slt, %22, %23 : vector<152x128xi32>
    %25 = vector.shape_cast %21 : vector<152x1xf32> to vector<152x1xf32>
    %26 = vector.broadcast %25 : vector<152x1xf32> to vector<152x128xf32>
    %27 = arith.select %24, %13, %26 : vector<152x128xi1>, vector<152x128xf32>
    %c0_12 = arith.constant 0 : index
    %c0_13 = arith.constant 0 : index
    %28 = vector.load %arg5[%c0_12, %c0_13] : memref<152x128xf32, #tpu.memory_space<vmem>>, vector<152x128xf32>
    tpu.vector_store %arg5[%c0_12, %c0_13], %27 {strides = array<i32>} : memref<152x128xf32, #tpu.memory_space<vmem>>, vector<152x128xf32>,
    return
  }
  func.func @transform_0(%arg0: i32) -> (i32, i32) {
    %c0_i32 = arith.constant 0 : i32
    %c0_i32_0 = arith.constant 0 : i32
    return %arg0, %c0_i32 : i32, i32
  }
  func.func @transform_1(%arg0: i32) -> (i32, i32) {
    %c0_i32 = arith.constant 0 : i32
    %c0_i32_0 = arith.constant 0 : i32
    %c0_i32_1 = arith.constant 0 : i32
    return %c0_i32, %c0_i32_0 : i32, i32
  }
  func.func @transform_2(%arg0: i32) -> (i32, i32) {
    %c0_i32 = arith.constant 0 : i32
    %c0_i32_0 = arith.constant 0 : i32
    %c0_i32_1 = arith.constant 0 : i32
    return %c0_i32, %c0_i32_0 : i32, i32
  }
  func.func @transform_3(%arg0: i32) -> (i32, i32) {
    %c0_i32 = arith.constant 0 : i32
    %c0_i32_0 = arith.constant 0 : i32
    %c0_i32_1 = arith.constant 0 : i32
    return %c0_i32, %c0_i32_0 : i32, i32
  }
  func.func @transform_4(%arg0: i32) -> (i32, i32) {
    %c0_i32 = arith.constant 0 : i32
    %c0_i32_0 = arith.constant 0 : i32
    return %arg0, %c0_i32 : i32, i32
  }
}

</mosaic_0001>

<bundles_post_ra>
// kernel: tpu_custom_call.1
= control target key start
LH: loop header
LB: loop body
LE: loop exit
PB: predicated region body
PF: predicated region fallthrough
CT: control target
= control target key end

     0   :  { %9 = vsyncpa [#allocation3], 0  ;;  %s1713_s0 = inlined_call_operand.vmem [shape: bf16[304,32], index: 0, kind: input, shape index: {}]   ;;  %s1714_s1 = inlined_call_operand.vmem [shape: bf16[32,128], index: 1, kind: input, shape index: {}]   ;;  %s1715_s2 = inlined_call_operand.vmem [shape: bf16[128,128], index: 2, kind: input, shape index: {}]   ;;  %s1716_s3 = inlined_call_operand.vmem [shape: f32[4,128], index: 3, kind: input, shape index: {}]   ;;  %s1717_s4 = inlined_call_operand.hbm [shape: f32[304,128], index: 4, kind: output, shape index: {}]  }
   0x1   :  { %11 = vsyncpa [#allocation3 + $0x1], 0  ;;  %s1341_s15 = smov 0   ;;  %s1343_s16 = smov 0  }
   0x2   :  { %s1345_s17 = smov 0   ;;  %s1347_s18 = smov 0  }
   0x3 LB: > { %s1362_s19 = sadd.s32 4294967295, %s1310_s18   ;;  %s958_s20 = sadd.s32 4294967294, %s1310_s18   ;;  %s1310_s18 = sphi %s1347_s18, %s1723_s18   ;;  %s1306_s17 = sphi %s1345_s17, %s1722_s17   ;;  %s1302_s16 = sphi %s1343_s16, %s1721_s16   ;;  %s1298_s15 = sphi %s1341_s15, %s1720_s15  }
   0x4   : > { %s1366_s21 = sadd.s32 1, %s1310_s18   ;;  %s113_s22 = sadd.s32 1, %s1306_s17 }
   0x5   : > { %s110_s23 = ssub.s32 %s1310_s18, %s1366_s21  ;;  %p123_p0 = scmp.ne.s32.totalorder %s1306_s17, %s1302_s16 }
   0x6   : > { %p111_p1 = scmp.eq.s32.totalorder %s110_s23, 0  ;;  %p124_p2 = scmp.eq.s32.totalorder %s1362_s19, 1 }
   0x7   : > { %p129_p3 = scmp.ne.s32.totalorder %s1302_s16, %s1298_s15  ;;  %p130_p4 = scmp.eq.s32.totalorder %s958_s20, 1 }
   0x8   : > { %s1377_s24 = scalar_select %p111_p1, %s1306_s17, %s113_s22  }
   0x9   : > { %p1379_p5 = por %p124_p2, %p123_p0  ;;  %p1383_p6 = por %p130_p4, %p129_p3 }
   0xa   : > { %p961_p7 = scmp.ge.s32.totalorder %s1310_s18, 1  ;;  %p166_p8 = scmp.lt.s32.totalorder %s1310_s18, 3 }
   0xc   : > { %p167_p9 = pnand %p961_p7, %p166_p8 }
   0xd   : > { %v1152_v0 = vld [vmem:[%s1714_s1] sm:$0xff] (!%p167_p9)   ;;  %s192_s29 = smul.u32 (!%p167_p9), 19, %s1362_s19  ;;  %v1153_v1 = vld [vmem:[%s1714_s1 + $0x8] sm:$0xff] (!%p167_p9)   ;;  %vm288_vm0 = vcmask (!%p167_p9), 261120   ;;  %v1166_v4 = vld [vmem:[%s1715_s2 + $0x10] sm:$0xff] (!%p167_p9)   ;;  %s189_s23 = sand.u32 (!%p167_p9), 1, %s1302_s16  }
   0xe   : > { %170 = sbr.rel (%p167_p9) target bundleno = 820 (0x334), region = 36  ;;  %1031 = vmatprep.subr.bf16.mxu0 (!%p167_p9), %v1152_v0  ;;  %v1164_v2 = vld [vmem:[%s1715_s2] sm:$0xff] (!%p167_p9)   ;;  %v1165_v3 = vld [vmem:[%s1715_s2 + $0x8] sm:$0xff] (!%p167_p9)   ;;  %v1167_v8 = vld [vmem:[%s1715_s2 + $0x18] sm:$0xff] (!%p167_p9)   ;;  %s1313_s9 = smov (!%p167_p9), [#allocation2]  }
   0xf   : > { %p193_p10 = scmp.lt.s32.totalorder (!%p167_p9), %s192_s29, 37  ;;  %1032 = vmatpush3.bf16.msra.mxu0 (!%p167_p9), %v1152_v0  ;;  %1091 = vmatprep.subr.bf16.mxu1 (!%p167_p9), %v1164_v2  ;;  %v1168_v9 = vld [vmem:[%s1715_s2 + $0x20] sm:$0xff] (!%p167_p9)   ;;  %v1169_v17 = vld [vmem:[%s1715_s2 + $0x28] sm:$0xff] (!%p167_p9)   ;;  %v1170_v18 = vld [vmem:[%s1715_s2 + $0x30] sm:$0xff] (!%p167_p9)   ;;  %s1107_s27 = smul.u32 (!%p167_p9), 152, %s189_s23 }
  0x10   : > { %1033 = vmatprep.subr.bf16.mxu0 (!%p167_p9), %v1153_v1  ;;  %1099 = vmatpush3.bf16.msra.mxu1 (!%p167_p9), %v1164_v2  ;;  %v1171_v19 = vld [vmem:[%s1715_s2 + $0x38] sm:$0xff] (!%p167_p9)   ;;  %v1448_v20 = vld [vmem:[%s1716_s3] ss:$0 sm:$0xff] (!%p167_p9) }
  0x11   : > { %1092 = vmatprep.subr.bf16.mxu1 (!%p167_p9), %v1165_v3  ;;  %s1586_s28 = scalar_lea.vmem (!%p167_p9), [#allocation2], %s1107_s27 }
  0x12   : > { %s896_s30 = sshll.u32 (!%p167_p9), %s1586_s28, 4  ;;  %s1664_s30 = int_to_ptr.vmem [resolvable:$true] %s896_s30 }
  0x13   : > { %1034 = vmatpush3.bf16.msra.mxu0 (!%p167_p9), %v1153_v1  ;;  %s1248_s8 = scalar_lea.vmem (!%p167_p9), %s1664_s30, 2432 }
  0x14   : > { %1055 = vmatprep.subr.bf16.mxu0 (!%p167_p9), %v1164_v2  ;;  %1100 = vmatpush3.bf16.msra.mxu1 (!%p167_p9), %v1165_v3  ;;  %p1249_p11 = scmp.ne.s32.totalorder (!%p167_p9), %s1664_s30, %s1248_s8 }
  0x15   : > { %s1725_s29 = smov (!%p193_p10, %s192_s29), 37  ;;  %1093 = vmatprep.subr.bf16.mxu1 %v1166_v4 }
  0x16   : > { %s962_s10 = sshll.u32 %s1725_s29, 2  ;;  %s1000_s29 = smul.u32 2432, %s1362_s19 }
  0x17   : > { %s1408_s20 = scalar_lea.vmem %s1713_s0, %s962_s10  ;;  %s1672_s19 = scalar_lea.sflag [#allocation3], %s189_s23 }
  0x18   : > { %v1154_v5 = vld [vmem:[%s1408_s20] sm:$0xff]   ;;  %v1155_v6 = vld [vmem:[%s1408_s20 + $0x8] sm:$0xff]   ;;  %v1156_v7 = vld [vmem:[%s1408_s20 + $0x10] sm:$0xff]   ;;  %1101 = vmatpush3.bf16.msra.mxu1 %v1166_v4  ;;  %s1662_s7 = scalar_lea.hbm %s1717_s4, %s1000_s29  ;;  %p1250_p12 = pnand %p1249_p11, %p1379_p5 }
  0x19   : > { %1035 = vmatprep.mubr.msk.bf16.mxu0 %vm288_vm0, %v1154_v5  ;;  %1094 = vmatprep.subr.bf16.mxu1 %v1167_v8  ;;  %v1157_v10 = vld [vmem:[%s1408_s20 + $0x18] sm:$0xff]   ;;  %v1158_v11 = vld [vmem:[%s1408_s20 + $0x20] sm:$0xff]   ;;  %v1159_v12 = vld [vmem:[%s1408_s20 + $0x28] sm:$0xff]   ;;  %s1252_s10 = sshll.u32 %s1313_s9, 4  ;;  %s1253_s10 = int_to_ptr.vmem [resolvable:$false] %s1252_s10 }
  0x1a   : > { %1036 = vmatmul.mubr.msk.bf16.vlgmr.msra.gmra.mrb[0].mxu0 %vm288_vm0, %v1155_v6  ;;  %v1160_v13 = vld [vmem:[%s1408_s20 + $0x30] sm:$0xff]   ;;  %v1161_v14 = vld [vmem:[%s1408_s20 + $0x38] sm:$0xff]   ;;  %v1162_v15 = vld [vmem:[%s1408_s20 + $0x40] sm:$0xff]   ;;  %p1251_p13 = pneg %p1250_p12  ;;  %s1254_s11 = scalar_lea.vmem %s1253_s10, 4864 }
  0x1b   : > { %1039 = vmatprep.mubr.msk.bf16.mxu0 %vm288_vm0, %v1156_v7  ;;  %1056 = vmatpush3.bf16.msra.mxu0 %v1164_v2  ;;  %v1163_v16 = vld [vmem:[%s1408_s20 + $0x48] ss:$0 sps:$4 sm:$0xff]   ;;  %p1255_p0 = scmp.lt.s32.totalorder %s1664_s30, %s1253_s10  ;;  %p1256_p1 = scmp.lt.s32.totalorder %s1254_s11, %s1248_s8 }
  0x1c   : > { %1057 = vmatprep.subr.bf16.mxu0 %v1165_v3  ;;  %1102 = vmatpush3.bf16.msra.mxu1 %v1167_v8 }
  0x1d   : > { %1095 = vmatprep.subr.bf16.mxu1 %v1168_v9  ;;  %p1257_p2 = por %p1256_p1, %p1255_p0 }
  0x1f   : > { %1058 = vmatpush3.bf16.msra.mxu0 %v1165_v3  ;;  %p1258_p3 = pnand %p1257_p2, %p1251_p13 }
  0x20   : > { %1059 = vmatprep.subr.bf16.mxu0 %v1166_v4  ;;  %1103 = vmatpush3.bf16.msra.mxu1 %v1168_v9 }
  0x21   : > { %1096 = vmatprep.subr.bf16.mxu1 %v1169_v17 }
  0x22   : > { %1040 = vmatmul.mubr.msk.bf16.gmra.mrb[4].mxu0 %vm288_vm0, %v1157_v10 }
  0x23   : > { %1043 = vmatprep.mubr.msk.bf16.mxu0 %vm288_vm0, %v1158_v11  ;;  %1060 = vmatpush3.bf16.msra.mxu0 %v1166_v4 }
  0x24   : > { %1061 = vmatprep.subr.bf16.mxu0 %v1167_v8  ;;  %1104 = vmatpush3.bf16.msra.mxu1 %v1169_v17 }
  0x25   : > { %1097 = vmatprep.subr.bf16.mxu1 %v1170_v18 }
  0x27   : > { %1062 = vmatpush3.bf16.msra.mxu0 %v1167_v8 }
  0x28   : > { %1063 = vmatprep.subr.bf16.mxu0 %v1168_v9  ;;  %1105 = vmatpush3.bf16.msra.mxu1 %v1170_v18 }
  0x29   : > { %1098 = vmatprep.subr.bf16.mxu1 %v1171_v19 }
  0x2a   : > { %1044 = vmatmul.mubr.msk.bf16.gmra.mrb[8].mxu0 %vm288_vm0, %v1159_v12 }
  0x2b   : > { %1047 = vmatprep.mubr.msk.bf16.mxu0 %vm288_vm0, %v1160_v13  ;;  %1064 = vmatpush3.bf16.msra.mxu0 %v1168_v9 }
  0x2c   : > { %1065 = vmatprep.subr.bf16.mxu0 %v1169_v17  ;;  %1106 = vmatpush3.bf16.msra.mxu1 %v1171_v19 }
  0x2f   : > { %1066 = vmatpush3.bf16.msra.mxu0 %v1169_v17 }
  0x30   : > { %1067 = vmatprep.subr.bf16.mxu0 %v1170_v18 }
  0x32   : > { %1048 = vmatmul.mubr.msk.bf16.gmra.mrb[12].mxu0 %vm288_vm0, %v1161_v14 }
  0x33   : > { %1051 = vmatprep.mubr.msk.bf16.mxu0 %vm288_vm0, %v1162_v15  ;;  %1068 = vmatpush3.bf16.msra.mxu0 %v1170_v18 }
  0x34   : > { %1069 = vmatprep.subr.bf16.mxu0 %v1171_v19 }
  0x37   : > { %1070 = vmatpush3.bf16.msra.mxu0 %v1171_v19 }
  0x3a   : > { %1052 = vmatmul.mubr.msk.bf16.gmra.mrb[16].mxu0 %vm288_vm0, %v1163_v16 }
  0xed   : > { %v1037_v21 = vpop.f32.mrb[0].mxu0 }
  0xee   : > { %v362_v22 = vadd.f32 %v1037_v21, %v1448_v20  ;;  %v353_v23 = vpop.f32.mrb[1].mxu0 }
  0xef   : > { %v354_v24 = vadd.f32 %v1448_v20, %v353_v23  ;;  %v1038_v25 = vpop.f32.mrb[2].mxu0 }
  0xf0   : > { %1172 = vtanh.f32 %v362_v22  ;;  %v365_v26 = vadd.f32 %v1038_v25, %v1448_v20  ;;  %v356_v27 = vpop.f32.mrb[3].mxu0 }
  0xf1   : > { %1174 = vtanh.f32 %v354_v24  ;;  %v357_v28 = vadd.f32 %v1448_v20, %v356_v27 }
  0xf2   : > { %1176 = vtanh.f32 %v365_v26 }
  0xf3   : > { %1178 = vtanh.f32 %v357_v28 }
  0xf5   : > { %v1041_v29 = vpop.f32.mrb[4].mxu0 }
  0xf6   : > { %v378_v30 = vadd.f32 %v1041_v29, %v1448_v20  ;;  %v369_v31 = vpop.f32.mrb[5].mxu0 }
  0xf7   : > { %v370_v32 = vadd.f32 %v1448_v20, %v369_v31  ;;  %v1042_v33 = vpop.f32.mrb[6].mxu0 }
  0xf8   : > { %1180 = vtanh.f32 %v378_v30  ;;  %v381_v34 = vadd.f32 %v1042_v33, %v1448_v20  ;;  %v372_v35 = vpop.f32.mrb[7].mxu0 }
  0xf9   : > { %1182 = vtanh.f32 %v370_v32  ;;  %v373_v36 = vadd.f32 %v1448_v20, %v372_v35 }
  0xfa   : > { %v1173_v37 = vpop.eup %1172  ;;  %1184 = vtanh.f32 %v381_v34 }
  0xfb   : > { %v1175_v38 = vpop.eup %1174  ;;  %1186 = vtanh.f32 %v373_v36 }
  0xfc   : > { %v1177_v39 = vpop.eup %1176 }
  0xfd   : > { %v1179_v40 = vpop.eup %1178  ;;  %v1045_v41 = vpop.f32.mrb[8].mxu0  ;;  %v451_v42 = vpack.c.bf16 %v1177_v39, %v1173_v37 }
  0xfe   : > { %v394_v43 = vadd.f32 %v1045_v41, %v1448_v20  ;;  %v385_v44 = vpop.f32.mrb[9].mxu0  ;;  %v450_v45 = vpack.c.bf16 %v1179_v40, %v1175_v38  ;;  %v1484_v41 = vld [vmem:[%s1716_s3 + $0x2] ss:$0 sm:$0xff] }
  0xff   : > { %v386_v46 = vadd.f32 %v1448_v20, %v385_v44  ;;  %v1046_v47 = vpop.f32.mrb[10].mxu0 }
 0x100   : > { %1188 = vtanh.f32 %v394_v43  ;;  %v397_v48 = vadd.f32 %v1046_v47, %v1448_v20  ;;  %v388_v49 = vpop.f32.mrb[11].mxu0  ;;  %1071 = vmatprep.mubr.bf16.mxu0 %v450_v45 }
 0x101   : > { %1190 = vtanh.f32 %v386_v46  ;;  %v389_v50 = vadd.f32 %v1448_v20, %v388_v49  ;;  %1072 = vmatmul.mubr.bf16.vlgmr.msra.gmra.mrb[20].mxu0 %v451_v42 }
 0x102   : > { %v1181_v51 = vpop.eup %1180  ;;  %1192 = vtanh.f32 %v397_v48 }
 0x103   : > { %v1183_v52 = vpop.eup %1182  ;;  %1194 = vtanh.f32 %v389_v50 }
 0x104   : > { %v1185_v53 = vpop.eup %1184 }
 0x105   : > { %v1187_v54 = vpop.eup %1186  ;;  %v1049_v55 = vpop.f32.mrb[12].mxu0  ;;  %v453_v56 = vpack.c.bf16 %v1185_v53, %v1181_v51 }
 0x106   : > { %v410_v57 = vadd.f32 %v1049_v55, %v1448_v20  ;;  %v401_v58 = vpop.f32.mrb[13].mxu0  ;;  %v452_v59 = vpack.c.bf16 %v1187_v54, %v1183_v52 }
 0x107   : > { %v402_v60 = vadd.f32 %v1448_v20, %v401_v58  ;;  %v1050_v61 = vpop.f32.mrb[14].mxu0 }
 0x108   : > { %1196 = vtanh.f32 %v410_v57  ;;  %v413_v62 = vadd.f32 %v1050_v61, %v1448_v20  ;;  %v404_v63 = vpop.f32.mrb[15].mxu0  ;;  %1075 = vmatprep.mubr.bf16.mxu1 %v452_v59 }
 0x109   : > { %1198 = vtanh.f32 %v402_v60  ;;  %v405_v0 = vadd.f32 %v1448_v20, %v404_v63  ;;  %1076 = vmatmul.mubr.bf16.vlgmr.msra.gmra.mrb[0].mxu1 %v453_v56 }
 0x10a   : > { %v1189_v1 = vpop.eup %1188  ;;  %1200 = vtanh.f32 %v413_v62 }
 0x10b   : > { %v1191_v2 = vpop.eup %1190  ;;  %1202 = vtanh.f32 %v405_v0 }
 0x10c   : > { %v1193_v3 = vpop.eup %1192 }
 0x10d   : > { %v1195_v4 = vpop.eup %1194  ;;  %v1053_v5 = vpop.f32.mrb[16].mxu0  ;;  %v455_v6 = vpack.c.bf16 %v1193_v3, %v1189_v1 }
 0x10e   : > { %v426_v7 = vadd.f32 %v1053_v5, %v1448_v20  ;;  %v417_v8 = vpop.f32.mrb[17].mxu0  ;;  %v454_v9 = vpack.c.bf16 %v1195_v4, %v1191_v2 }
 0x10f   : > { %v418_v10 = vadd.f32 %v1448_v20, %v417_v8  ;;  %v1054_v11 = vpop.f32.mrb[18].mxu0 }
 0x110   : > { %1204 = vtanh.f32 %v426_v7  ;;  %v420_v12 = vpop.f32.mrb[19].mxu0  ;;  %1079 = vmatprep.mubr.bf16.mxu1 %v454_v9 }
 0x111   : > { %1206 = vtanh.f32 %v418_v10  ;;  %v421_v13 = vadd.f32 %v1448_v20, %v420_v12  ;;  %1080 = vmatmul.mubr.bf16.gmra.mrb[4].mxu1 %v455_v6  ;;  %v1472_v20 = vld [vmem:[%s1716_s3 + $0x1] ss:$0 sm:$0xff] }
 0x112   : > { %v1197_v14 = vpop.eup %1196 }
 0x113   : > { %v1199_v15 = vpop.eup %1198  ;;  %1208 = vtanh.f32 %v421_v13 }
 0x114   : > { %v1201_v16 = vpop.eup %1200 }
 0x115   : > { %v1203_v17 = vpop.eup %1202  ;;  %v457_v18 = vpack.c.bf16 %v1201_v16, %v1197_v14 }
 0x116   : > { %v456_v19 = vpack.c.bf16 %v1203_v17, %v1199_v15  ;;  %v1312_v15 = vmov 0  }
 0x117   : > { %1150 = vset.pattern.permute.xlu1 %v1312_v15  ;;  %1151 = vset.pattern.permute.xlu0 %v1312_v15 }
 0x118   : > { %1083 = vmatprep.mubr.bf16.mxu1 %v456_v19 }
 0x119   : > { %1084 = vmatmul.mubr.bf16.gmra.mrb[8].mxu1 %v457_v18 }
 0x11a   : > { %v1205_v21 = vpop.eup %1204 }
 0x11b   : > { %v1207_v22 = vpop.eup %1206  ;;  %v459_v24 = vpack.c.bf16 %v1205_v21, %v1205_v21 }
 0x11d   : > { %v1209_v23 = vpop.eup %1208 }
 0x11e   : > { %v458_v25 = vpack.c.bf16 %v1209_v23, %v1207_v22 }
 0x120   : > { %1087 = vmatprep.mubr.bf16.mxu1 %v458_v25 }
 0x121   : > { %1088 = vmatmul.mubr.bf16.gmra.mrb[12].mxu1 %v459_v24 }
 0x1d4   : > { %v1073_v26 = vpop.f32.mrb[20].mxu0 }
 0x1d5   : > { %v572_v27 = vadd.f32 %v1073_v26, %v1472_v20  ;;  %v563_v28 = vpop.f32.mrb[21].mxu0 }
 0x1d6   : > { %v564_v29 = vadd.f32 %v1472_v20, %v563_v28  ;;  %v1074_v30 = vpop.f32.mrb[22].mxu0 }
 0x1d7   : > { %1210 = vtanh.f32 %v572_v27  ;;  %v575_v31 = vadd.f32 %v1074_v30, %v1472_v20  ;;  %v566_v32 = vpop.f32.mrb[23].mxu0 }
 0x1d8   : > { %1212 = vtanh.f32 %v564_v29  ;;  %v567_v33 = vadd.f32 %v1472_v20, %v566_v32 }
 0x1d9   : > { %1214 = vtanh.f32 %v575_v31 }
 0x1da   : > { %1216 = vtanh.f32 %v567_v33 }
 0x1dc   : > { %v1077_v34 = vpop.f32.mrb[0].mxu1 }
 0x1dd   : > { %v588_v35 = vadd.f32 %v1077_v34, %v1472_v20  ;;  %v579_v36 = vpop.f32.mrb[1].mxu1 }
 0x1de   : > { %v580_v37 = vadd.f32 %v1472_v20, %v579_v36  ;;  %v1078_v38 = vpop.f32.mrb[2].mxu1 }
 0x1df   : > { %1218 = vtanh.f32 %v588_v35  ;;  %v591_v39 = vadd.f32 %v1078_v38, %v1472_v20  ;;  %v582_v40 = vpop.f32.mrb[3].mxu1 }
 0x1e0   : > { %v583_v42 = vadd.f32 %v1472_v20, %v582_v40 }
 0x1e1   : > { %v1487_v43 = vpop.eup %1210  ;;  %1220 = vtanh.f32 %v591_v39 }
 0x1e2   : > { %v1489_v44 = vpop.eup %1212  ;;  %1222 = vtanh.f32 %v580_v37  ;;  %v667_v45 = vmul.f32 %v1487_v43, %v1484_v41 }
 0x1e3   : > { %v1493_v46 = vpop.eup %1214  ;;  %1224 = vtanh.f32 %v583_v42  ;;  %v665_v47 = vmul.f32 %v1489_v44, %v1484_v41  ;;  %v996_v42 = vld [vmem:[%s1716_s3 + $0x3] ss:$0 sm:$0xff] }
 0x1e4   : > { %v1497_v48 = vpop.eup %1216  ;;  %v1081_v49 = vpop.f32.mrb[4].mxu1  ;;  %688 = vadd.xlane.f32.xlu1 %v667_v45  ;;  %v668_v54 = vmul.f32 %v1493_v46, %v1484_v41 }
 0x1e5   : > { %v604_v50 = vadd.f32 %v1081_v49, %v1472_v20  ;;  %v595_v51 = vpop.f32.mrb[5].mxu1  ;;  %684 = vadd.xlane.f32.xlu0 %v665_v47  ;;  %v666_v57 = vmul.f32 %v1497_v48, %v1484_v41 }
 0x1e6   : > { %v596_v52 = vadd.f32 %v1472_v20, %v595_v51  ;;  %v1082_v53 = vpop.f32.mrb[6].mxu1 }
 0x1e7   : > { %1226 = vtanh.f32 %v604_v50  ;;  %v607_v55 = vadd.f32 %v1082_v53, %v1472_v20  ;;  %v598_v56 = vpop.f32.mrb[7].mxu1 }
 0x1e8   : > { %1228 = vtanh.f32 %v596_v52  ;;  %v599_v58 = vadd.f32 %v1472_v20, %v598_v56  ;;  %690 = vadd.xlane.f32.xlu1 %v668_v54 }
 0x1e9   : > { %v1507_v59 = vpop.eup %1218  ;;  %1230 = vtanh.f32 %v607_v55  ;;  %686 = vadd.xlane.f32.xlu0 %v666_v57 }
 0x1ea   : > { %v671_v60 = vmul.f32 %v1507_v59, %v1484_v41  ;;  %1232 = vtanh.f32 %v599_v58 }
 0x1eb   : > { %v1511_v61 = vpop.eup %1220 }
 0x1ec   : > { %v1513_v62 = vpop.eup %1222  ;;  %v1085_v63 = vpop.f32.mrb[8].mxu1  ;;  %v672_v0 = vmul.f32 %v1511_v61, %v1484_v41 }
 0x1ed   : > { %v1517_v1 = vpop.eup %1224  ;;  %v620_v2 = vadd.f32 %v1085_v63, %v1472_v20  ;;  %696 = vadd.xlane.f32.xlu0 %v671_v60  ;;  %v611_v3 = vpop.f32.mrb[9].mxu1  ;;  %v669_v7 = vmul.f32 %v1513_v62, %v1484_v41 }
 0x1ee   : > { %v612_v4 = vadd.f32 %v1472_v20, %v611_v3  ;;  %698 = vadd.xlane.f32.xlu1 %v672_v0  ;;  %v1086_v5 = vpop.f32.mrb[10].mxu1  ;;  %v670_v9 = vmul.f32 %v1517_v1, %v1484_v41 }
 0x1ef   : > { %1234 = vtanh.f32 %v620_v2  ;;  %v623_v6 = vadd.f32 %v1086_v5, %v1472_v20  ;;  %v614_v8 = vpop.f32.mrb[11].mxu1 }
 0x1f0   : > { %1236 = vtanh.f32 %v612_v4  ;;  %v615_v10 = vadd.f32 %v1472_v20, %v614_v8 }
 0x1f1   : > { %v1527_v11 = vpop.eup %1226  ;;  %1238 = vtanh.f32 %v623_v6  ;;  %692 = vadd.xlane.f32.xlu0 %v669_v7 }
 0x1f2   : > { %v1529_v12 = vpop.eup %1228  ;;  %694 = vadd.xlane.f32.xlu1 %v670_v9  ;;  %1240 = vtanh.f32 %v615_v10  ;;  %v675_v13 = vmul.f32 %v1527_v11, %v1484_v41 }
 0x1f3   : > { %v1533_v14 = vpop.eup %1230  ;;  %v673_v22 = vmul.f32 %v1529_v12, %v1484_v41 }
 0x1f4   : > { %v1089_v16 = vpop.f32.mrb[12].mxu1  ;;  %v676_v17 = vmul.f32 %v1533_v14, %v1484_v41  ;;  %v1537_v18 = vpop.eup %1232 }
 0x1f5   : > { %v636_v19 = vadd.f32 %v1089_v16, %v1472_v20  ;;  %v627_v21 = vpop.f32.mrb[13].mxu1  ;;  %704 = vadd.xlane.f32.xlu0 %v675_v13  ;;  %v674_v26 = vmul.f32 %v1537_v18, %v1484_v41 }
 0x1f6   : > { %v628_v23 = vadd.f32 %v1472_v20, %v627_v21  ;;  %706 = vadd.xlane.f32.xlu1 %v676_v17  ;;  %v1090_v24 = vpop.f32.mrb[14].mxu1 }
 0x1f7   : > { %1242 = vtanh.f32 %v636_v19  ;;  %v630_v25 = vpop.f32.mrb[15].mxu1 }
 0x1f8   : > { %1244 = vtanh.f32 %v628_v23  ;;  %v631_v27 = vadd.f32 %v1472_v20, %v630_v25 }
 0x1f9   : > { %v1546_v28 = vpop.eup %1234  ;;  %700 = vadd.xlane.f32.xlu0 %v673_v22 }
 0x1fa   : > { %v1548_v29 = vpop.eup %1236  ;;  %702 = vadd.xlane.f32.xlu1 %v674_v26  ;;  %1246 = vtanh.f32 %v631_v27  ;;  %v679_v30 = vmul.f32 %v1546_v28, %v1484_v41 }
 0x1fb   : > { %v1552_v31 = vpop.eup %1238  ;;  %v677_v20 = vmul.f32 %v1548_v29, %v1484_v41 }
 0x1fc   : > { %v1554_v32 = vpop.eup %1240  ;;  %v680_v33 = vmul.f32 %v1552_v31, %v1484_v41 }
 0x1fd   : > { %712 = vadd.xlane.f32.xlu0 %v679_v30  ;;  %v678_v34 = vmul.f32 %v1554_v32, %v1484_v41 }
 0x1fe   : > { %714 = vadd.xlane.f32.xlu1 %v680_v33  ;;  %v746_v33 = vlaneseq }
 0x201   : > { %v1562_v35 = vpop.eup %1242  ;;  %708 = vadd.xlane.f32.xlu0 %v677_v20  ;;  %v1578_v20 = vand.u32 127, %v746_v33 }
 0x202   : > { %v1564_v36 = vpop.eup %1244  ;;  %710 = vadd.xlane.f32.xlu1 %v678_v34  ;;  %v683_v39 = vmul.f32 %v1562_v35, %v1484_v41 }
 0x203   : > { %v681_v37 = vmul.f32 %v1564_v36, %v1484_v41  ;;  %vm748_vm1 = vcmp.lt.s32.totalorder %v1578_v20, 64 }
 0x204   : > { %v1568_v38 = vpop.eup %1246 }
 0x205   : > { %716 = vadd.xlane.f32.xlu0 %v681_v37  ;;  %v682_v40 = vmul.f32 %v1568_v38, %v1484_v41 }
 0x207   : > { %718 = vadd.xlane.f32.xlu1 %v682_v40 }
 0x209   : > { %720 = vadd.xlane.f32.xlu0 %v683_v39 }
 0x271   : > { %v689_v45 = vpop.xlane.xlu1 %688 }
 0x272   : > { %v729_v47 = vadd.f32 %v996_v42, %v689_v45  ;;  %v685_v49 = vpop.xlane.xlu0 %684 }
 0x273   : > { %v727_v50 = vadd.f32 %v996_v42, %v685_v49 }
 0x274   : > { %761 = vperm.xlu1 %1150, %v729_v47  }
 0x275   : > { %v691_v52 = vpop.xlane.xlu1 %690 }
 0x276   : > { %v687_v51 = vpop.xlane.xlu0 %686  ;;  %v730_v54 = vadd.f32 %v996_v42, %v691_v52 }
 0x277   : > { %v728_v53 = vadd.f32 %v996_v42, %v687_v51 }
 0x278   : > { %751 = vperm.xlu1 %1150, %v727_v50  }
 0x279   : > { %756 = vperm.xlu0 %1151, %v728_v53  }
 0x27a   : > { %v697_v55 = vpop.xlane.xlu0 %696 }
 0x27b   : > { %v699_v41 = vpop.xlane.xlu1 %698  ;;  %v733_v56 = vadd.f32 %v996_v42, %v697_v55 }
 0x27c   : > { %766 = vperm.xlu1 %1150, %v730_v54   ;;  %v734_v2 = vadd.f32 %v996_v42, %v699_v41 }
 0x27e   : > { %v693_v57 = vpop.xlane.xlu0 %692 }
 0x27f   : > { %v731_v58 = vadd.f32 %v996_v42, %v693_v57  ;;  %v695_v63 = vpop.xlane.xlu1 %694 }
 0x280   : > { %781 = vperm.xlu1 %1150, %v733_v56   ;;  %v732_v5 = vadd.f32 %v996_v42, %v695_v63 }
 0x282   : > { %v705_v60 = vpop.xlane.xlu0 %704 }
 0x283   : > { %v737_v0 = vadd.f32 %v996_v42, %v705_v60  ;;  %v707_v4 = vpop.xlane.xlu1 %706 }
 0x284   : > { %771 = vperm.xlu1 %1150, %v731_v58   ;;  %v738_v15 = vadd.f32 %v996_v42, %v707_v4 }
 0x285   : > { %801 = vperm.xlu0 %1151, %v737_v0  }
 0x286   : > { %v701_v3 = vpop.xlane.xlu0 %700 }
 0x287   : > { %v735_v8 = vadd.f32 %v996_v42, %v701_v3  ;;  %v703_v10 = vpop.xlane.xlu1 %702 }
 0x288   : > { %786 = vperm.xlu1 %1150, %v734_v2   ;;  %v736_v21 = vadd.f32 %v996_v42, %v703_v10 }
 0x28a   : > { %v713_v6 = vpop.xlane.xlu0 %712 }
 0x28b   : > { %v741_v7 = vadd.f32 %v996_v42, %v713_v6  ;;  %v715_v19 = vpop.xlane.xlu1 %714 }
 0x28c   : > { %776 = vperm.xlu1 %1150, %v732_v5   ;;  %v742_v24 = vadd.f32 %v996_v42, %v715_v19 }
 0x28d   : > { %821 = vperm.xlu0 %1151, %v741_v7  }
 0x28e   : > { %v709_v9 = vpop.xlane.xlu0 %708 }
 0x28f   : > { %v739_v13 = vadd.f32 %v996_v42, %v709_v9  ;;  %v711_v25 = vpop.xlane.xlu1 %710 }
 0x290   : > { %791 = vperm.xlu1 %1150, %v735_v8   ;;  %v740_v26 = vadd.f32 %v996_v42, %v711_v25 }
 0x291   : > { %811 = vperm.xlu0 %1151, %v739_v13  }
 0x292   : > { %v717_v16 = vpop.xlane.xlu0 %716 }
 0x293   : > { %v743_v17 = vadd.f32 %v996_v42, %v717_v16 }
 0x294   : > { %806 = vperm.xlu1 %1150, %v738_v15   ;;  %v719_v27 = vpop.xlane.xlu1 %718 }
 0x295   : > { %831 = vperm.xlu0 %1151, %v743_v17   ;;  %v744_v30 = vadd.f32 %v996_v42, %v719_v27 }
 0x296   : > { %v721_v22 = vpop.xlane.xlu0 %720 }
 0x297   : > { %v745_v23 = vadd.f32 %v996_v42, %v721_v22 }
 0x298   : > { %796 = vperm.xlu1 %1150, %v736_v21  }
 0x299   : > { %841 = vperm.xlu0 %1151, %v745_v23  }
 0x29c   : > { %826 = vperm.xlu1 %1150, %v742_v24  }
 0x2a0   : > { %816 = vperm.xlu1 %1150, %v740_v26  }
 0x2a4   : > { %836 = vperm.xlu1 %1150, %v744_v30  }
 0x2f3   : > { %v762_v34 = vpop.permute.xlu1 %761 }
 0x2f4   : > { %v846_v37 = vsel %vm748_vm1, %v1487_v43, %v762_v34 }
 0x2f5   : > { %865 = vst [vmem:[%s1586_s28 + $0x10] sm:$0xff] %v846_v37 }
 0x2f7   : > { %v752_v39 = vpop.permute.xlu1 %751 }
 0x2f8   : > { %v844_v40 = vsel %vm748_vm1, %v1489_v44, %v752_v39  ;;  %v757_v42 = vpop.permute.xlu0 %756 }
 0x2f9   : > { %863 = vst [vmem:[%s1586_s28] sm:$0xff] %v844_v40  ;;  %v845_v43 = vsel %vm748_vm1, %v1497_v48, %v757_v42 }
 0x2fa   : > { %864 = vst [vmem:[%s1586_s28 + $0x8] sm:$0xff] %v845_v43 }
 0x2fb   : > { %v767_v45 = vpop.permute.xlu1 %766 }
 0x2fc   : > { %v847_v47 = vsel %vm748_vm1, %v1493_v46, %v767_v45 }
 0x2fd   : > { %866 = vst [vmem:[%s1586_s28 + $0x18] sm:$0xff] %v847_v47 }
 0x2ff   : > { %v782_v49 = vpop.permute.xlu1 %781 }
 0x300   : > { %v850_v44 = vsel %vm748_vm1, %v1507_v59, %v782_v49 }
 0x301   : > { %869 = vst [vmem:[%s1586_s28 + $0x30] sm:$0xff] %v850_v44 }
 0x303   : > { %v772_v50 = vpop.permute.xlu1 %771 }
 0x304   : > { %v848_v48 = vsel %vm748_vm1, %v1513_v62, %v772_v50  ;;  %v802_v51 = vpop.permute.xlu0 %801 }
 0x305   : > { %867 = vst [vmem:[%s1586_s28 + $0x20] sm:$0xff] %v848_v48  ;;  %v854_v46 = vsel %vm748_vm1, %v1527_v11, %v802_v51 }
 0x306   : > { %873 = vst [vmem:[%s1586_s28 + $0x50] sm:$0xff] %v854_v46 }
 0x307   : > { %v787_v52 = vpop.permute.xlu1 %786 }
 0x308   : > { %v851_v59 = vsel %vm748_vm1, %v1511_v61, %v787_v52 }
 0x309   : > { %870 = vst [vmem:[%s1586_s28 + $0x38] sm:$0xff] %v851_v59 }
 0x30b   : > { %v777_v53 = vpop.permute.xlu1 %776 }
 0x30c   : > { %v849_v62 = vsel %vm748_vm1, %v1517_v1, %v777_v53  ;;  %v822_v54 = vpop.permute.xlu0 %821 }
 0x30d   : > { %868 = vst [vmem:[%s1586_s28 + $0x28] sm:$0xff] %v849_v62  ;;  %v858_v11 = vsel %vm748_vm1, %v1546_v28, %v822_v54 }
 0x30e   : > { %877 = vst [vmem:[%s1586_s28 + $0x70] sm:$0xff] %v858_v11 }
 0x30f   : > { %v792_v55 = vpop.permute.xlu1 %791 }
 0x310   : > { %v852_v61 = vsel %vm748_vm1, %v1529_v12, %v792_v55  ;;  %v812_v41 = vpop.permute.xlu0 %811 }
 0x311   : > { %871 = vst [vmem:[%s1586_s28 + $0x40] sm:$0xff] %v852_v61  ;;  %v856_v1 = vsel %vm748_vm1, %v1548_v29, %v812_v41 }
 0x312   : > { %875 = vst [vmem:[%s1586_s28 + $0x60] sm:$0xff] %v856_v1 }
 0x313   : > { %v807_v56 = vpop.permute.xlu1 %806 }
 0x314   : > { %v855_v28 = vsel %vm748_vm1, %v1533_v14, %v807_v56  ;;  %v832_v57 = vpop.permute.xlu0 %831 }
 0x315   : > { %874 = vst [vmem:[%s1586_s28 + $0x58] sm:$0xff] %v855_v28  ;;  %v860_v12 = vsel %vm748_vm1, %v1564_v36, %v832_v57 }
 0x316   : > { %879 = vst [vmem:[%s1586_s28 + $0x80] sm:$0xff] %v860_v12 }
 0x317   : > { %v797_v58 = vpop.permute.xlu1 %796 }
 0x318   : > { %v853_v29 = vsel %vm748_vm1, %v1537_v18, %v797_v58  ;;  %v842_v60 = vpop.permute.xlu0 %841 }
 0x319   : > { %872 = vst [vmem:[%s1586_s28 + $0x48] sm:$0xff] %v853_v29  ;;  %v862_v14 = vsel %vm748_vm1, %v1562_v35, %v842_v60 }
 0x31a   : > { %881 = vst [vmem:[%s1586_s28 + $0x90] sm:$0xff] %v862_v14 }
 0x31b   : > { %v827_v63 = vpop.permute.xlu1 %826 }
 0x31c   : > { %v859_v36 = vsel %vm748_vm1, %v1552_v31, %v827_v63 }
 0x31d   : > { %878 = vst [vmem:[%s1586_s28 + $0x78] sm:$0xff] %v859_v36 }
 0x31f   : > { %v817_v0 = vpop.permute.xlu1 %816 }
 0x320   : > { %v857_v18 = vsel %vm748_vm1, %v1554_v32, %v817_v0 }
 0x321   : > { %876 = vst [vmem:[%s1586_s28 + $0x68] sm:$0xff] %v857_v18 }
 0x323   : > { %v837_v31 = vpop.permute.xlu1 %836 }
 0x324   : > { %v861_v35 = vsel %vm748_vm1, %v1568_v38, %v837_v31 }
 0x325   : > { %880 = vst [vmem:[%s1586_s28 + $0x88] sm:$0xff] %v861_v35 }
 0x326   : > { %1261 = shalt.err (!%p1258_p3)
}
 0x327   : > { %s1262_s12 = scalar_lea.hbm %s1662_s7, 2432  ;;  %s1266_s20 = scalar_lea.hbm %s1717_s4, 4864 }
 0x328   : > { %p1263_p4 = scmp.ne.s32.totalorder %s1662_s7, %s1262_s12  ;;  %p1267_p9 = scmp.lt.u32.totalorder %s1662_s7, %s1717_s4 }
 0x329   : > { %p1268_p10 = scmp.lt.u32.totalorder %s1266_s20, %s1262_s12  ;;  %p1270_p12 = scmp.lt.u32.totalorder %s1262_s12, %s1662_s7 }
 0x32a   : > { %p1264_p7 = pnand %p1263_p4, %p1379_p5 }
 0x32b   : > { %p1269_p11 = por %p1268_p10, %p1267_p9 }
 0x32c   : > { %p1265_p8 = pneg %p1264_p7 }
 0x32d   : > { %p1271_p13 = por %p1270_p12, %p1269_p11 }
 0x32f   : > { %p1272_p0 = pnand %p1271_p13, %p1265_p8 }
 0x331   : > { %1275 = shalt.err (!%p1272_p0)
}
 0x332   : > { %s1314_s27 = smov 128   ;;  %s1315_s28 = smov 8  }
 0x333   : > { %1108 = dma.vmem_to_hbm [thread:$0]  (%p1379_p5), %s1664_s30, 2432, %s1662_s7, %s1672_s19, %s1314_s27, %s1314_s27, %s1315_s28  }
 0x334 PF: > { %p1114_p1 = scmp.ge.s32.totalorder %s1310_s18, 2  ;;  %s911_s29 = sand.u32 1, %s1298_s15  }
 0x335   : > { %s912_s5 = scalar_lea.sflag [#allocation3], %s911_s29 }
 0x336   : > { %p1111_p2 = pnand %p1114_p1, %p1383_p6 }
 0x338   : > { %1293 = dma.done.wait (!%p1111_p2), %s912_s5, 2432  }
 0x339   : > { %1295 = vsyncadd (!%p1111_p2), %s912_s5, 4294964864  ;;  %p14_p3 = scmp.ge.s32.totalorder %s1366_s21, 4   ;;  %s1720_s15 = smov %s1302_s16 }
 0x33a   : > { %s1721_s16 = smov %s1306_s17  ;;  %s1722_s17 = smov %s1377_s24 }
 0x33b   : > { %s1723_s18 = smov %s1366_s21  ;;  %16 = sbr.rel (!%p14_p3) target bundleno = 3 (0x3), region = 71 }
 0x342   :  { %917 = vsyncpa [#allocation3], 1 }
 0x343   :  { %919 = vsyncpa [#allocation3 + $0x1], 1 }

</bundles_post_ra>
